<compile_context>
chip_gen: v6e
topology: v6e:2x2x1
jax: 0.10.0
libtpu: 0.0.40
codegen_flags: <defaults>
</compile_context>

<pallas_src>
import functools
import typing as _typing

import jax
import jax.numpy as jnp
from jax.experimental import pallas as pl
from jax.experimental.pallas import tpu as pltpu

_MIB = 1024 * 1024


def _round_up(x: int, m: int) -> int:
    return ((x + m - 1) // m) * m


def _cdiv(a: int, b: int) -> int:
    return -(-a // b)


def _vmem_budgets() -> _typing.Tuple[int, int]:
    """(per-step stream budget, vmem_limit cap), generation aware."""
    try:
        cap = int(pltpu.get_tpu_info().vmem_capacity_bytes)
    except Exception:  # no TPU info available -> be conservative
        cap = 0
    if cap >= 96 * _MIB:        # v5e / v6e: 128 MiB physical VMEM per core
        return 32 * _MIB, 96 * _MIB
    return 14 * _MIB, 48 * _MIB  # v7x (64 MiB per core) or unknown


# --------------------------------------------------------------------------
# Kernels
# --------------------------------------------------------------------------
def _fused_kernel(a_ref, x_ref, w_ref, scale_ref, bias_ref, out_ref, acc_ref):
    """Single-pass: acc += A_tile @ (X_tile @ W); epilogue scale + bias."""
    ni = pl.program_id(0)

    @pl.when(ni == 0)
    def _init():
        acc_ref[...] = jnp.zeros_like(acc_ref)

    # Project first (bf16 MXU, f32 accumulate), then pool the projected rows.
    y = jnp.dot(x_ref[...], w_ref[...], preferred_element_type=jnp.float32)
    acc_ref[...] += jnp.dot(a_ref[...], y.astype(jnp.bfloat16),
                            preferred_element_type=jnp.float32)

    @pl.when(ni == pl.num_programs(0) - 1)
    def _finalize():
        out_ref[...] = (acc_ref[...] * scale_ref[...]
                        + bias_ref[...]).astype(out_ref.dtype)


def _project_kernel(x_ref, w_ref, y_ref):
    """Pass 1 (large-G path): Y_tile = X_tile @ W, stored bf16."""
    y_ref[...] = jnp.dot(x_ref[...], w_ref[...],
                         preferred_element_type=jnp.float32).astype(y_ref.dtype)


def _pool_kernel(a_ref, y_ref, scale_ref, bias_ref, out_ref, acc_ref):
    """Pass 2 (large-G path): acc += A_tile @ Y_tile; epilogue scale + bias."""
    ni = pl.program_id(1)

    @pl.when(ni == 0)
    def _init():
        acc_ref[...] = jnp.zeros_like(acc_ref)

    acc_ref[...] += jnp.dot(a_ref[...], y_ref[...],
                            preferred_element_type=jnp.float32)

    @pl.when(ni == pl.num_programs(1) - 1)
    def _finalize():
        out_ref[...] = (acc_ref[...] * scale_ref[...]
                        + bias_ref[...]).astype(out_ref.dtype)


# --------------------------------------------------------------------------
# pallas_call wrappers
# --------------------------------------------------------------------------
def _fused_call(assign, x_cat, w_cat, scale, bias, *, n_tile, vmem_limit, cost):
    g_pad, n_pad = assign.shape
    _, d_pad = x_cat.shape
    _, o_pad = w_cat.shape
    return pl.pallas_call(
        _fused_kernel,
        out_shape=jax.ShapeDtypeStruct((g_pad, o_pad), jnp.float32),
        grid_spec=pltpu.PrefetchScalarGridSpec(
            num_scalar_prefetch=0,
            grid=(n_pad // n_tile,),
            in_specs=[
                pl.BlockSpec((g_pad, n_tile), lambda ni: (0, ni)),   # A (bf16)
                pl.BlockSpec((n_tile, d_pad), lambda ni: (ni, 0)),   # X_cat (bf16)
                pl.BlockSpec((d_pad, o_pad), lambda ni: (0, 0)),     # W_cat (bf16)
                pl.BlockSpec((g_pad, 1), lambda ni: (0, 0)),         # per-graph scale
                pl.BlockSpec((1, o_pad), lambda ni: (0, 0)),         # bias_sum
            ],
            out_specs=pl.BlockSpec((g_pad, o_pad), lambda ni: (0, 0)),
            scratch_shapes=[pltpu.VMEM((g_pad, o_pad), jnp.float32)],
        ),
        compiler_params=pltpu.CompilerParams(
            dimension_semantics=("arbitrary",),
            vmem_limit_bytes=vmem_limit,
        ),
        cost_estimate=cost,
    )(assign, x_cat, w_cat, scale, bias)


def _project_call(x_cat, w_cat, *, n_tile, vmem_limit, cost):
    n_pad, d_pad = x_cat.shape
    _, o_pad = w_cat.shape
    return pl.pallas_call(
        _project_kernel,
        out_shape=jax.ShapeDtypeStruct((n_pad, o_pad), jnp.bfloat16),
        grid_spec=pltpu.PrefetchScalarGridSpec(
            num_scalar_prefetch=0,
            grid=(n_pad // n_tile,),
            in_specs=[
                pl.BlockSpec((n_tile, d_pad), lambda ni: (ni, 0)),
                pl.BlockSpec((d_pad, o_pad), lambda ni: (0, 0)),
            ],
            out_specs=pl.BlockSpec((n_tile, o_pad), lambda ni: (ni, 0)),
        ),
        compiler_params=pltpu.CompilerParams(
            dimension_semantics=("parallel",),
            vmem_limit_bytes=vmem_limit,
        ),
        cost_estimate=cost,
    )(x_cat, w_cat)


def _pool_call(assign, y, scale, bias, *, g_tile, n_tile, vmem_limit, cost):
    g_pad, n_pad = assign.shape
    _, o_pad = y.shape
    return pl.pallas_call(
        _pool_kernel,
        out_shape=jax.ShapeDtypeStruct((g_pad, o_pad), jnp.float32),
        grid_spec=pltpu.PrefetchScalarGridSpec(
            num_scalar_prefetch=0,
            grid=(g_pad // g_tile, n_pad // n_tile),
            in_specs=[
                pl.BlockSpec((g_tile, n_tile), lambda gi, ni: (gi, ni)),  # A
                pl.BlockSpec((n_tile, o_pad), lambda gi, ni: (ni, 0)),    # Y
                pl.BlockSpec((g_tile, 1), lambda gi, ni: (gi, 0)),        # scale
                pl.BlockSpec((1, o_pad), lambda gi, ni: (0, 0)),          # bias
            ],
            out_specs=pl.BlockSpec((g_tile, o_pad), lambda gi, ni: (gi, 0)),
            scratch_shapes=[pltpu.VMEM((g_tile, o_pad), jnp.float32)],
        ),
        compiler_params=pltpu.CompilerParams(
            dimension_semantics=("parallel", "arbitrary"),
            vmem_limit_bytes=vmem_limit,
        ),
        cost_estimate=cost,
    )(assign, y, scale, bias)


# --------------------------------------------------------------------------
# Public wrapper (forward pass of _JKSumPoolDecoder, eval mode)
# --------------------------------------------------------------------------
def jk_sum_pool_decoder(
    features: _typing.Sequence[jax.Array],   # features[i]: [num_nodes, D_i]
    segment_ids: jax.Array,                   # [num_nodes] int32, node -> graph id
    num_graphs: int,
    weights: _typing.Sequence[jax.Array],     # weights[i]: [D_i, output_dim]
    biases: _typing.Sequence[jax.Array],      # biases[i]:  [1, output_dim]
    graph_pooling_type: str = "sum",
    dropout: float = 0.5,                     # API parity; eval mode => identity
    *,
    force_two_pass: bool = False,
) -> jax.Array:
    if len(features) != len(weights) or len(features) != len(biases) or not features:
        raise ValueError
    if not isinstance(graph_pooling_type, str):
        raise TypeError
    pool = graph_pooling_type.lower()
    if pool not in ("sum", "mean"):
        # TODO(synk): max pooling is a masked segment-max, not a matmul; needs its own kernel.
        raise NotImplementedError

    num_nodes = int(segment_ids.shape[0])
    output_dim = int(weights[0].shape[1])

    # Fold all JK layers into one projection. MXU streams are bf16 (f32 accumulation
    # stays inside the kernels); bias/scale stay f32.
    x_cat = jnp.concatenate([f.astype(jnp.bfloat16) for f in features], axis=1)
    w_cat = jnp.concatenate([w.astype(jnp.bfloat16) for w in weights], axis=0)
    bias_sum = functools.reduce(
        lambda a, b: a + b,
        [b.astype(jnp.float32).reshape(1, -1) for b in biases])
    d_tot = int(x_cat.shape[1])

    o_pad = _round_up(output_dim, 128)
    d_pad = _round_up(d_tot, 128)

    stream_budget, vmem_cap = _vmem_budgets()
    seg = segment_ids.astype(jnp.int32)

    def _build_assign(g_pad: int, n_pad: int) -> jax.Array:
        # Binary membership matrix; exact in bf16.
        # TODO(synk): for very large G*N, build pooling from scalar-prefetched per-graph
        # node offsets (contiguous segments) instead of a dense one-hot matrix.
        graph_ids = jnp.arange(g_pad, dtype=jnp.int32)
        a = (seg[None, :] == graph_ids[:, None]).astype(jnp.bfloat16)
        return jnp.pad(a, ((0, 0), (0, n_pad - num_nodes)))

    def _build_scale(g_pad: int) -> jax.Array:
        if pool == "sum":
            return jnp.ones((g_pad, 1), jnp.float32)
        counts = jax.ops.segment_sum(
            jnp.ones((num_nodes,), jnp.float32), seg, num_segments=g_pad)
        return (1.0 / jnp.maximum(counts, 1.0)).reshape(g_pad, 1)

    bias_p = jnp.pad(bias_sum, ((0, 0), (0, o_pad - output_dim)))
    w_p = jnp.pad(w_cat, ((0, d_pad - d_tot), (0, o_pad - output_dim)))

    # Dropout: torch.nn.Dropout is identity in eval mode (inference semantics here).
    # TODO(synk): training-mode dropout (scaled Bernoulli mask) not implemented.

    # Fused single-pass path: all graphs resident in one f32 accumulator.
    g_full = _round_up(max(num_graphs, 1), 16)
    fused_ok = (not force_two_pass) and (g_full * o_pad * 4 <= 4 * _MIB)

    if fused_ok:
        g_pad = g_full
        # n_tile against the double-buffered A/X bf16 streams plus the in-VMEM
        # [n_tile, o_pad] projection intermediate (f32 + bf16 copy).
        n_tile = 2048
        while n_tile > 128 and (
                2 * 2 * n_tile * (g_pad + d_pad) + 6 * n_tile * o_pad) > stream_budget:
            n_tile //= 2
        n_tile = min(n_tile, _round_up(num_nodes, 128))
        n_pad = _round_up(num_nodes, n_tile)

        assign = _build_assign(g_pad, n_pad)
        scale = _build_scale(g_pad)
        x_p = jnp.pad(x_cat, ((0, n_pad - num_nodes), (0, d_pad - d_tot)))

        est = (2 * 2 * n_tile * (g_pad + d_pad)   # A/X double buffers (bf16)
               + 6 * n_tile * o_pad               # projection intermediate
               + 2 * 2 * d_pad * o_pad            # W (constant block index)
               + 3 * 4 * g_pad * o_pad            # accumulator + output buffers
               + 4 * 2 * (g_pad + o_pad))         # scale + bias
        vmem_limit = int(min(max(2 * est, 8 * _MIB), vmem_cap))
        cost = pl.CostEstimate(
            flops=2 * n_pad * d_pad * o_pad + 2 * g_pad * n_pad * o_pad,
            transcendentals=0,
            bytes_accessed=(assign.size * 2 + x_p.size * 2 + w_p.size * 2
                            + g_pad * o_pad * 4))
        out = _fused_call(assign, x_p, w_p, scale, bias_p,
                          n_tile=n_tile, vmem_limit=vmem_limit, cost=cost)
        return out[:num_graphs, :output_dim]

    # Two-pass path (large G, or forced): Y = X_cat @ W_cat, then out = A @ Y.
    # Both cores stay busy on v7x and X@W is computed exactly once.
    g_cap = 512
    n_gt = _cdiv(num_graphs, g_cap)
    g_tile = _round_up(_cdiv(num_graphs, n_gt), 16)   # minimal graph-row padding
    g_pad = _round_up(num_graphs, g_tile)

    n_tile_p = 2048
    while n_tile_p > 128 and 2 * 2 * n_tile_p * (d_pad + o_pad) > stream_budget:
        n_tile_p //= 2
    n_tile_q = 2048
    while n_tile_q > 128 and 2 * 2 * n_tile_q * (g_tile + o_pad) > stream_budget:
        n_tile_q //= 2
    n_tile = min(n_tile_p, n_tile_q, _round_up(num_nodes, 128))
    n_pad = _round_up(num_nodes, n_tile)

    x_p = jnp.pad(x_cat, ((0, n_pad - num_nodes), (0, d_pad - d_tot)))
    assign = _build_assign(g_pad, n_pad)
    scale = _build_scale(g_pad)

    est1 = 2 * 2 * n_tile * (d_pad + o_pad) + 2 * 2 * d_pad * o_pad
    vmem1 = int(min(max(2 * est1, 8 * _MIB), vmem_cap))
    cost1 = pl.CostEstimate(
        flops=2 * n_pad * d_pad * o_pad, transcendentals=0,
        bytes_accessed=x_p.size * 2 + w_p.size * 2 + n_pad * o_pad * 2)
    y = _project_call(x_p, w_p, n_tile=n_tile, vmem_limit=vmem1, cost=cost1)

    est2 = (2 * 2 * n_tile * (g_tile + o_pad) + 3 * 4 * g_tile * o_pad
            + 4 * 2 * (g_tile + o_pad))
    vmem2 = int(min(max(2 * est2, 8 * _MIB), vmem_cap))
    cost2 = pl.CostEstimate(
        flops=2 * g_pad * n_pad * o_pad, transcendentals=0,
        bytes_accessed=assign.size * 2 + n_pad * o_pad * 2 + g_pad * o_pad * 4)
    out = _pool_call(assign, y, scale, bias_p, g_tile=g_tile, n_tile=n_tile,
                     vmem_limit=vmem2, cost=cost2)
    return out[:num_graphs, :output_dim]


if __name__ == "__main__":
    key = jax.random.PRNGKey(0)

    # Small shapes consistent with the module's forward:
    #   features[i]: [num_nodes, input_dimensions[i]] ; output: [num_graphs, output_dim]
    input_dimensions = [32, 16]
    output_dimension = 8
    num_nodes = 16
    num_graphs = 2

    # Batched-graph node -> graph assignment (first 9 nodes in graph 0, rest in graph 1).
    segment_ids = jnp.array([0] * 9 + [1] * (num_nodes - 9), dtype=jnp.int32)

    keys = jax.random.split(key, 3 * len(input_dimensions))
    features, weights, biases = [], [], []
    k_idx = 0
    for d in input_dimensions:
        features.append(jax.random.normal(keys[k_idx], (num_nodes, d), jnp.float32))
        k_idx += 1
        bound = 1.0 / float(d) ** 0.5
        weights.append(jax.random.uniform(keys[k_idx], (d, output_dimension),
                                          minval=-bound, maxval=bound,
                                          dtype=jnp.float32))
        k_idx += 1
        biases.append(jax.random.uniform(keys[k_idx], (1, output_dimension),
                                         minval=-bound, maxval=bound,
                                         dtype=jnp.float32))
        k_idx += 1

    # Reference: f32 math on the same bf16-rounded X/W the kernel streams
    # (documents the mixed-precision policy: bf16 MXU inputs, f32 accumulation).
    feats_r = [f.astype(jnp.bfloat16).astype(jnp.float32) for f in features]
    wts_r = [w.astype(jnp.bfloat16).astype(jnp.float32) for w in weights]

    ok = True
    for pool_type in ("sum", "mean"):
        ref = jnp.zeros((num_graphs, output_dimension), jnp.float32)
        for f, w, b in zip(feats_r, wts_r, biases):
            pooled = jax.ops.segment_sum(f, segment_ids, num_segments=num_graphs)
            if pool_type == "mean":
                cnt = jax.ops.segment_sum(jnp.ones((num_nodes, 1), jnp.float32),
                                          segment_ids, num_segments=num_graphs)
                pooled = pooled / jnp.maximum(cnt, 1.0)
            ref = ref + pooled @ w + b

        for two_pass in (False, True):     # exercise both kernel structures
            out = jk_sum_pool_decoder(
                features, segment_ids, num_graphs, weights, biases,
                graph_pooling_type=pool_type, dropout=0.5,
                force_two_pass=two_pass)
            out = jax.block_until_ready(out)
            good = bool(jnp.allclose(out, ref, atol=3e-2, rtol=3e-2))
            assert good, (pool_type, two_pass, out, ref)
            ok = ok and good

    if ok:
        print("KERNEL_OK")
</pallas_src>

<mosaic_0001>
module attributes {stable_mosaic.version = 11 : i64} {
  func.func @_fused_kernel(%arg0: i32, %arg1: memref<16x128xbf16, #tpu.memory_space<vmem>>, %arg2: memref<128x128xbf16, #tpu.memory_space<vmem>>, %arg3: memref<128x128xbf16, #tpu.memory_space<vmem>>, %arg4: memref<16x1xf32, #tpu.memory_space<vmem>>, %arg5: memref<1x128xf32, #tpu.memory_space<vmem>>, %arg6: memref<16x128xf32, #tpu.memory_space<vmem>>, %arg7: memref<16x128xf32, #tpu.memory_space<vmem>>) attributes {dimension_semantics = [#tpu.dimension_semantics<arbitrary>], iteration_bounds = array<i64: 1>, scalar_prefetch = 0 : i64, scratch_operands = 1 : i64, tpu.core_type = #tpu.core_type<tc>, window_params = [{transform_indices = @transform_0, window_bounds = array<i64: 16, 128>}, {transform_indices = @transform_1, window_bounds = array<i64: 128, 128>}, {pipeline_mode = #tpu.pipeline_mode<synchronous>, transform_indices = @transform_2, window_bounds = array<i64: 128, 128>}, {pipeline_mode = #tpu.pipeline_mode<synchronous>, transform_indices = @transform_3, window_bounds = array<i64: 16, 1>}, {pipeline_mode = #tpu.pipeline_mode<synchronous>, transform_indices = @transform_4, window_bounds = array<i64: 1, 128>}, {pipeline_mode = #tpu.pipeline_mode<synchronous>, transform_indices = @transform_5, window_bounds = array<i64: 16, 128>}]} {
    %c0_i32 = arith.constant 0 : i32
    %0 = arith.cmpi eq, %arg0, %c0_i32 : i32
    %1 = arith.extui %0 : i1 to i32
    %c0_i32_0 = arith.constant 0 : i32
    %2 = arith.cmpi ne, %1, %c0_i32_0 : i32
    scf.if %2 {
      %cst_13 = arith.constant 0.000000e+00 : f32
      %15 = vector.broadcast %cst_13 : f32 to vector<16x128xf32>
      %c0_14 = arith.constant 0 : index
      %c0_15 = arith.constant 0 : index
      %16 = vector.load %arg7[%c0_14, %c0_15] : memref<16x128xf32, #tpu.memory_space<vmem>>, vector<16x128xf32>
      tpu.vector_store %arg7[%c0_14, %c0_15], %15 {strides = array<i32>} : memref<16x128xf32, #tpu.memory_space<vmem>>, vector<16x128xf32>,
    } else {
    }
    %c0 = arith.constant 0 : index
    %c0_1 = arith.constant 0 : index
    %3 = vector.load %arg2[%c0, %c0_1] : memref<128x128xbf16, #tpu.memory_space<vmem>>, vector<128x128xbf16>
    %c0_2 = arith.constant 0 : index
    %c0_3 = arith.constant 0 : index
    %4 = vector.load %arg3[%c0_2, %c0_3] : memref<128x128xbf16, #tpu.memory_space<vmem>>, vector<128x128xbf16>
    %cst = arith.constant dense<0.000000e+00> : vector<128x128xf32>
    %5 = tpu.matmul %3, %4, %cst {dimension_numbers = #tpu.dot_dimension_numbers<[1], [0], [0], [1], [0, 0, 1, 1], [], []>} : vector<128x128xbf16>, vector<128x128xbf16>, vector<128x128xf32> -> vector<128x128xf32>
    %c0_4 = arith.constant 0 : index
    %c0_5 = arith.constant 0 : index
    %6 = vector.load %arg7[%c0_4, %c0_5] : memref<16x128xf32, #tpu.memory_space<vmem>>, vector<16x128xf32>
    %c0_6 = arith.constant 0 : index
    %c0_7 = arith.constant 0 : index
    %7 = vector.load %arg1[%c0_6, %c0_7] : memref<16x128xbf16, #tpu.memory_space<vmem>>, vector<16x128xbf16>
    %8 = arith.truncf %5 : vector<128x128xf32> to vector<128x128xbf16>
    %cst_8 = arith.constant dense<0.000000e+00> : vector<16x128xf32>
    %9 = tpu.matmul %7, %8, %cst_8 {dimension_numbers = #tpu.dot_dimension_numbers<[1], [0], [0], [1], [0, 0, 1, 1], [], []>} : vector<16x128xbf16>, vector<128x128xbf16>, vector<16x128xf32> -> vector<16x128xf32>
    %10 = arith.addf %6, %9 : vector<16x128xf32>
    %c0_9 = arith.constant 0 : index
    %c0_10 = arith.constant 0 : index
    %11 = vector.load %arg7[%c0_9, %c0_10] : memref<16x128xf32, #tpu.memory_space<vmem>>, vector<16x128xf32>
    tpu.vector_store %arg7[%c0_9, %c0_10], %10 {strides = array<i32>} : memref<16x128xf32, #tpu.memory_space<vmem>>, vector<16x128xf32>,
    %c0_i32_11 = arith.constant 0 : i32
    %12 = arith.cmpi eq, %arg0, %c0_i32_11 : i32
    %13 = arith.extui %12 : i1 to i32
    %c0_i32_12 = arith.constant 0 : i32
    %14 = arith.cmpi ne, %13, %c0_i32_12 : i32
    scf.if %14 {
      %c0_13 = arith.constant 0 : index
      %c0_14 = arith.constant 0 : index
      %15 = vector.load %arg7[%c0_13, %c0_14] : memref<16x128xf32, #tpu.memory_space<vmem>>, vector<16x128xf32>
      %c0_15 = arith.constant 0 : index
      %c0_16 = arith.constant 0 : index
      %16 = vector.load %arg4[%c0_15, %c0_16] : memref<16x1xf32, #tpu.memory_space<vmem>>, vector<16x1xf32>
      %17 = vector.broadcast %16 : vector<16x1xf32> to vector<16x128xf32>
      %18 = arith.mulf %15, %17 : vector<16x128xf32>
      %c0_17 = arith.constant 0 : index
      %c0_18 = arith.constant 0 : index
      %19 = vector.load %arg5[%c0_17, %c0_18] : memref<1x128xf32, #tpu.memory_space<vmem>>, vector<1x128xf32>
      %20 = vector.broadcast %19 : vector<1x128xf32> to vector<16x128xf32>
      %21 = arith.addf %18, %20 : vector<16x128xf32>
      %c0_19 = arith.constant 0 : index
      %c0_20 = arith.constant 0 : index
      %22 = vector.load %arg6[%c0_19, %c0_20] : memref<16x128xf32, #tpu.memory_space<vmem>>, vector<16x128xf32>
      tpu.vector_store %arg6[%c0_19, %c0_20], %21 {strides = array<i32>} : memref<16x128xf32, #tpu.memory_space<vmem>>, vector<16x128xf32>,
    } else {
    }
    return
  }
  func.func @transform_0(%arg0: i32) -> (i32, i32) {
    %c0_i32 = arith.constant 0 : i32
    %c0_i32_0 = arith.constant 0 : i32
    return %c0_i32, %arg0 : i32, i32
  }
  func.func @transform_1(%arg0: i32) -> (i32, i32) {
    %c0_i32 = arith.constant 0 : i32
    %c0_i32_0 = arith.constant 0 : i32
    return %arg0, %c0_i32 : i32, i32
  }
  func.func @transform_2(%arg0: i32) -> (i32, i32) {
    %c0_i32 = arith.constant 0 : i32
    %c0_i32_0 = arith.constant 0 : i32
    %c0_i32_1 = arith.constant 0 : i32
    return %c0_i32, %c0_i32_0 : i32, i32
  }
  func.func @transform_3(%arg0: i32) -> (i32, i32) {
    %c0_i32 = arith.constant 0 : i32
    %c0_i32_0 = arith.constant 0 : i32
    %c0_i32_1 = arith.constant 0 : i32
    return %c0_i32, %c0_i32_0 : i32, i32
  }
  func.func @transform_4(%arg0: i32) -> (i32, i32) {
    %c0_i32 = arith.constant 0 : i32
    %c0_i32_0 = arith.constant 0 : i32
    %c0_i32_1 = arith.constant 0 : i32
    return %c0_i32, %c0_i32_0 : i32, i32
  }
  func.func @transform_5(%arg0: i32) -> (i32, i32) {
    %c0_i32 = arith.constant 0 : i32
    %c0_i32_0 = arith.constant 0 : i32
    %c0_i32_1 = arith.constant 0 : i32
    return %c0_i32, %c0_i32_0 : i32, i32
  }
}

</mosaic_0001>

<bundles_post_ra>
// kernel: tpu_custom_call.1
= control target key start
LH: loop header
LB: loop body
LE: loop exit
PB: predicated region body
PF: predicated region fallthrough
CT: control target
= control target key end

     0   :  { %10 = vsyncpa [#allocation4], 0  ;;  %s642_s0 = inlined_call_operand.vmem [shape: bf16[16,128], index: 0, kind: input, shape index: {}]   ;;  %s643_s1 = inlined_call_operand.hbm [shape: bf16[128,128], index: 1, kind: input, shape index: {}]   ;;  %s644_s2 = inlined_call_operand.hbm [shape: bf16[128,128], index: 2, kind: input, shape index: {}]   ;;  %s645_s3 = inlined_call_operand.vmem [shape: f32[16,1], index: 3, kind: input, shape index: {}]   ;;  %s646_s4 = inlined_call_operand.vmem [shape: f32[1,128], index: 4, kind: input, shape index: {}]   ;;  %s647_s5 = inlined_call_operand.hbm [shape: f32[16,128], index: 5, kind: output, shape index: {}]  }
   0x1   :  { %11 = vsyncpa [#allocation7], 0 }
   0x2   :  { %12 = vsyncpa [#allocation5], 0  ;;  %s581_s18 = smov [#allocation3]  }
   0x3   :  { %s20_s19 = sshll.u32 %s581_s18, 4  ;;  %s21_s19 = int_to_ptr.vmem [resolvable:$true] %s20_s19 }
   0x4   :  { %s523_s20 = scalar_lea.vmem %s21_s19, 1024  ;;  %p528_p1 = scmp.lt.s32.totalorder %s21_s19, %s21_s19 }
   0x5   :  { %p524_p0 = scmp.ne.s32.totalorder %s21_s19, %s523_s20  ;;  %p529_p2 = scmp.lt.s32.totalorder %s523_s20, %s523_s20 }
   0x7   :  { %p530_p3 = por %p529_p2, %p528_p1 }
   0x9   :  { %p531_p4 = pnand %p530_p3, %p524_p0 }
   0xb   :  { %534 = shalt.err (!%p531_p4)
}
   0xc   :  { %s582_s21 = smov 64   ;;  %s583_s22 = smov 4  }
   0xd   :  { %26 = dma.hbm_to_vmem [thread:$0]  %s643_s1, 1024, %s21_s19, [#allocation4], %s582_s21, %s582_s21, %s583_s22  }
   0xe   :  { %s584_s25 = smov [#allocation6]  }
   0xf   :  { %s32_s26 = sshll.u32 %s584_s25, 4  ;;  %s33_s26 = int_to_ptr.vmem [resolvable:$true] %s32_s26 }
  0x10   :  { %s543_s27 = scalar_lea.vmem %s33_s26, 1024  ;;  %p548_p6 = scmp.lt.s32.totalorder %s33_s26, %s33_s26 }
  0x11   :  { %p544_p5 = scmp.ne.s32.totalorder %s33_s26, %s543_s27  ;;  %p549_p7 = scmp.lt.s32.totalorder %s543_s27, %s543_s27 }
  0x13   :  { %p550_p8 = por %p549_p7, %p548_p6 }
  0x15   :  { %p551_p9 = pnand %p550_p8, %p544_p5 }
  0x17   :  { %554 = shalt.err (!%p551_p9)
}
  0x18   :  { %38 = dma.hbm_to_vmem [thread:$0]  %s644_s2, 1024, %s33_s26, [#allocation7], %s582_s21, %s582_s21, %s583_s22  }
  0x19   :  { %575 = dma.done.wait [#allocation4], 1024  }
  0x1a   :  { %576 = vsyncadd [#allocation4], 4294966272 }
  0x1b   :  { %577 = dma.done.wait [#allocation7], 1024  }
  0x1c   :  { %578 = vsyncadd [#allocation7], 4294966272  ;;  %v498_v0 = vld [vmem:[#allocation6 + $0x38] sm:$0xff]   ;;  %v499_v1 = vld [vmem:[#allocation6 + $0x30] sm:$0xff]   ;;  %v585_v16 = vmov 0.0   ;;  %vm586_vm0 = vmmov 0  }
  0x1d   :  { %435 = vmatprep.subr.bf16.mxu0 %v498_v0  ;;  %v500_v2 = vld [vmem:[#allocation6 + $0x28] sm:$0xff]   ;;  %v501_v3 = vld [vmem:[#allocation6 + $0x20] sm:$0xff]   ;;  %v502_v5 = vld [vmem:[#allocation6 + $0x18] sm:$0xff]   ;;  %467 = vmatprep.subr.bf16.mxu1 %v585_v16  ;;  %v587_v18 = vmov 0   ;;  %s588_s10 = smov [#allocation8]  }
  0x1e   :  { %436 = vmatpush3.bf16.msra.mxu0 %v498_v0  ;;  %v506_v4 = vld [vmem:[#allocation3] sm:$0xff]   ;;  %v503_v6 = vld [vmem:[#allocation6 + $0x10] sm:$0xff]   ;;  %v504_v7 = vld [vmem:[#allocation6 + $0x8] sm:$0xff]   ;;  %483 = vmatprep.mubr.msk.bf16.mxu1 %vm586_vm0, %v585_v16  ;;  %s379_s11 = sshll.u32 %s588_s10, 4  ;;  %s380_s11 = int_to_ptr.vmem [resolvable:$true] %s379_s11 }
  0x1f   :  { %437 = vmatprep.subr.bf16.mxu0 %v499_v1  ;;  %451 = vmatprep.mubr.bf16.mxu0 %v506_v4  ;;  %v505_v8 = vld [vmem:[#allocation6] sm:$0xff]   ;;  %v507_v9 = vld [vmem:[#allocation3 + $0x8] sm:$0xff]   ;;  %v508_v10 = vld [vmem:[#allocation3 + $0x10] sm:$0xff]   ;;  %p560_p11 = scmp.lt.s32.totalorder %s380_s11, %s380_s11 }
  0x20   :  { %v509_v11 = vld [vmem:[#allocation3 + $0x18] sm:$0xff]   ;;  %v510_v12 = vld [vmem:[#allocation3 + $0x20] sm:$0xff]   ;;  %v511_v13 = vld [vmem:[#allocation3 + $0x28] sm:$0xff]   ;;  %497 = vset.pattern.permute.xlu0 %v587_v18 }
  0x21   :  { %v512_v14 = vld [vmem:[#allocation3 + $0x30] sm:$0xff]   ;;  %v513_v15 = vld [vmem:[#allocation3 + $0x38] sm:$0xff]   ;;  %v349_v17 = vld [vmem:[%s645_s3] sm:$0xff] }
  0x22   :  { %438 = vmatpush3.bf16.msra.mxu0 %v499_v1  ;;  %353 = vperm.xlu0 %497, %v349_v17   ;;  %v350_v19 = vld [vmem:[%s645_s3 + $0x8] sm:$0xff]  ;;  %v514_v44 = vld [vmem:[%s642_s0] sm:$0xff]   ;;  %s555_s0 = scalar_lea.vmem %s380_s11, 256 }
  0x23   :  { %439 = vmatprep.subr.bf16.mxu0 %v500_v2  ;;  %v409_v47 = vld [vmem:[%s646_s4] ss:$0 sm:$0xff]  ;;  %p556_p10 = scmp.ne.s32.totalorder %s380_s11, %s555_s0  ;;  %p561_p12 = scmp.lt.s32.totalorder %s555_s0, %s555_s0 }
  0x25   :  { %p562_p13 = por %p561_p12, %p560_p11 }
  0x26   :  { %440 = vmatpush3.bf16.msra.mxu0 %v500_v2  ;;  %358 = vperm.xlu0 %497, %v350_v19  }
  0x27   :  { %441 = vmatprep.subr.bf16.mxu0 %v501_v3  ;;  %p563_p0 = pnand %p562_p13, %p556_p10 }
  0x2a   :  { %442 = vmatpush3.bf16.msra.mxu0 %v501_v3 }
  0x2b   :  { %443 = vmatprep.subr.bf16.mxu0 %v502_v5 }
  0x2e   :  { %444 = vmatpush3.bf16.msra.mxu0 %v502_v5 }
  0x2f   :  { %445 = vmatprep.subr.bf16.mxu0 %v503_v6 }
  0x32   :  { %446 = vmatpush3.bf16.msra.mxu0 %v503_v6 }
  0x33   :  { %447 = vmatprep.subr.bf16.mxu0 %v504_v7 }
  0x36   :  { %448 = vmatpush3.bf16.msra.mxu0 %v504_v7 }
  0x37   :  { %449 = vmatprep.subr.bf16.mxu0 %v505_v8 }
  0x3a   :  { %450 = vmatpush3.bf16.msra.mxu0 %v505_v8 }
  0x3d   :  { %452 = vmatmul.mubr.bf16.vlgmr.msra.gmra.mxu0 %v507_v9 }
  0x3e   :  { %455 = vmatprep.mubr.bf16.mxu0 %v508_v10 }
  0x45   :  { %456 = vmatmul.mubr.bf16.gmra.mxu0 %v509_v11 }
  0x46   :  { %459 = vmatprep.mubr.bf16.mxu0 %v510_v12 }
  0x4d   :  { %460 = vmatmul.mubr.bf16.gmra.mxu0 %v511_v13 }
  0x4e   :  { %463 = vmatprep.mubr.bf16.mxu0 %v512_v14 }
  0x55   :  { %464 = vmatmul.mubr.bf16.gmra.mxu0 %v513_v15 }
  0x9d   :  { %v354_v45 = vpop.permute.xlu0 %353 }
  0xa1   :  { %v359_v51 = vpop.permute.xlu0 %358 }
  0xfd   :  { %v453_v20 = vpop.f32.mrf.mxu0 }
  0xff   :  { %v218_v21 = vpop.f32.mrf.mxu0 }
 0x101   :  { %v454_v22 = vpop.f32.mrf.mxu0 }
 0x102   :  { %v286_v42 = vpack.c.bf16 %v454_v22, %v453_v20 }
 0x103   :  { %v221_v23 = vpop.f32.mrf.mxu0 }
 0x104   :  { %v285_v43 = vpack.c.bf16 %v221_v23, %v218_v21 }
 0x105   :  { %v457_v24 = vpop.f32.mrf.mxu0 }
 0x107   :  { %v234_v25 = vpop.f32.mrf.mxu0 }
 0x109   :  { %v458_v26 = vpop.f32.mrf.mxu0 }
 0x10a   :  { %v288_v40 = vpack.c.bf16 %v458_v26, %v457_v24 }
 0x10b   :  { %v237_v27 = vpop.f32.mrf.mxu0 }
 0x10c   :  { %v287_v41 = vpack.c.bf16 %v237_v27, %v234_v25 }
 0x10d   :  { %v461_v28 = vpop.f32.mrf.mxu0 }
 0x10f   :  { %v250_v29 = vpop.f32.mrf.mxu0 }
 0x111   :  { %v462_v30 = vpop.f32.mrf.mxu0 }
 0x112   :  { %v290_v38 = vpack.c.bf16 %v462_v30, %v461_v28 }
 0x113   :  { %v253_v31 = vpop.f32.mrf.mxu0 }
 0x114   :  { %v289_v39 = vpack.c.bf16 %v253_v31, %v250_v29 }
 0x115   :  { %v465_v32 = vpop.f32.mrf.mxu0 }
 0x117   :  { %v266_v33 = vpop.f32.mrf.mxu0 }
 0x119   :  { %v466_v34 = vpop.f32.mrf.mxu0 }
 0x11a   :  { %v292_v35 = vpack.c.bf16 %v466_v34, %v465_v32 }
 0x11b   :  { %v269_v36 = vpop.f32.mrf.mxu0 }
 0x11c   :  { %468 = vmatpush3.bf16.msra.mxu1 %v292_v35  ;;  %v291_v37 = vpack.c.bf16 %v269_v36, %v266_v33 }
 0x11d   :  { %469 = vmatprep.subr.bf16.mxu1 %v585_v16 }
 0x120   :  { %470 = vmatpush3.bf16.msra.mxu1 %v291_v37 }
 0x121   :  { %471 = vmatprep.subr.bf16.mxu1 %v585_v16 }
 0x124   :  { %472 = vmatpush3.bf16.msra.mxu1 %v290_v38 }
 0x125   :  { %473 = vmatprep.subr.bf16.mxu1 %v585_v16 }
 0x128   :  { %474 = vmatpush3.bf16.msra.mxu1 %v289_v39 }
 0x129   :  { %475 = vmatprep.subr.bf16.mxu1 %v585_v16 }
 0x12c   :  { %476 = vmatpush3.bf16.msra.mxu1 %v288_v40 }
 0x12d   :  { %477 = vmatprep.subr.bf16.mxu1 %v585_v16 }
 0x130   :  { %478 = vmatpush3.bf16.msra.mxu1 %v287_v41 }
 0x131   :  { %479 = vmatprep.subr.bf16.mxu1 %v585_v16 }
 0x134   :  { %480 = vmatpush3.bf16.msra.mxu1 %v286_v42 }
 0x135   :  { %481 = vmatprep.subr.bf16.mxu1 %v585_v16 }
 0x138   :  { %482 = vmatpush3.bf16.msra.mxu1 %v285_v43 }
 0x13b   :  { %484 = vmatmul.mubr.bf16.vlgmr.msra.gmra.mxu1 %v514_v44 }
 0x1fb   :  { %v333_v46 = vpop.f32.mrf.mxu1 }
 0x1fc   :  { %v361_v48 = vmul.f32 %v354_v45, %v333_v46 }
 0x1fd   :  { %v485_v49 = vpop.f32.mrf.mxu1 }
 0x1fe   :  { %v370_v50 = vadd.f32 %v409_v47, %v361_v48 }
 0x1ff   :  { %v336_v52 = vpop.f32.mrf.mxu1 }
 0x200   :  { %372 = vst [vmem:[#allocation8] sm:$0xff] %v370_v50  ;;  %v362_v53 = vmul.f32 %v359_v51, %v336_v52 }
 0x201   :  { %v486_v54 = vpop.f32.mrf.mxu1 }
 0x202   :  { %v371_v55 = vadd.f32 %v409_v47, %v362_v53 }
 0x204   :  { %373 = vst [vmem:[#allocation8 + $0x8] sm:$0xff] %v371_v55 }
 0x205   :  { %566 = shalt.err (!%p563_p0)
}
 0x206   :  { %s589_s4 = smov 128   ;;  %s590_s12 = smov 8  }
 0x207   :  { %385 = dma.vmem_to_hbm [thread:$0]  %s380_s11, 256, %s647_s5, [#allocation5], %s589_s4, %s589_s4, %s590_s12  }
 0x208   :  { %579 = dma.done.wait [#allocation5], 256  }
 0x209   :  { %580 = vsyncadd [#allocation5], 4294967040 }
 0x20a   :  { %389 = vsyncpa [#allocation4], 1 }
 0x20b   :  { %390 = vsyncpa [#allocation7], 1 }
 0x20c   :  { %391 = vsyncpa [#allocation5], 1 }

</bundles_post_ra>
